<compile_context>
chip_gen: v5e
topology: v5e:2x2
jax: 0.10.0
libtpu: 0.0.40
codegen_flags: <defaults>
</compile_context>

<pallas_src>
import math

import jax
import jax.numpy as jnp
from jax.experimental import pallas as pl
from jax.experimental.pallas import tpu as pltpu

_EPS = 1e-8        # F.cosine_similarity default eps
_FILL = -1e30      # padding value: always < any distance threshold (>= 0)


# ----------------------------- kernel 1 ------------------------------------
def _cosine_distance_kernel(t_ref, s_ref, d_ref):
    # t_ref, s_ref: (C, BR, 128) blocks; d_ref: (BR, 128) block.
    t = t_ref[...].astype(jnp.float32)
    s = s_ref[...].astype(jnp.float32)
    w12 = jnp.sum(t * s, axis=0)          # channel reduction -> (BR, 128)
    w1 = jnp.sum(t * t, axis=0)
    w2 = jnp.sum(s * s, axis=0)
    # 1 / max(||t|| * ||s||, eps)  ==  rsqrt(max(w1*w2, eps^2))
    inv = jax.lax.rsqrt(jnp.maximum(w1 * w2, _EPS * _EPS))
    d_ref[...] = 1.0 - w12 * inv


def _pick_block_rows(total_rows, c, itemsize, budget_bytes=12 << 20, max_rows=1024):
    """Largest sublane-row tile that keeps double-buffered blocks under budget."""
    # 2 inputs x 2 pipeline buffers x (c x 128 x itemsize) + f32 output x 2 bufs.
    per_row_bytes = 128 * (4 * c * itemsize + 2 * 4)
    cap = max(8, min(max_rows, budget_bytes // per_row_bytes))
    cap = (cap // 8) * 8
    if total_rows <= cap:
        return total_rows                  # full extent -> always a legal block
    br = cap
    while br >= 8 and total_rows % br != 0:
        br -= 8
    return br if br >= 8 else total_rows   # fallback: whole extent


def cosine_distance_pallas(t_nchw, s_nchw, vmem_budget_bytes=12 << 20):
    """1 - cosine_similarity over the channel axis; returns flat (N*H*W,) f32."""
    n, c, h, w = t_nchw.shape
    hw = h * w
    t3 = t_nchw.reshape(n, c, hw)          # free reshape; NO transpose
    s3 = s_nchw.reshape(n, c, hw)
    hwp = ((hw + 127) // 128) * 128
    if hwp != hw:                          # lane-align only when needed (copy)
        t3 = jnp.pad(t3, ((0, 0), (0, 0), (0, hwp - hw)))
        s3 = jnp.pad(s3, ((0, 0), (0, 0), (0, hwp - hw)))
    rows = hwp // 128
    t4 = t3.reshape(n, c, rows, 128)
    s4 = s3.reshape(n, c, rows, 128)
    br = _pick_block_rows(rows, c, t4.dtype.itemsize, vmem_budget_bytes)

    d = pl.pallas_call(
        _cosine_distance_kernel,
        out_shape=jax.ShapeDtypeStruct((n, rows, 128), jnp.float32),
        grid=(n, rows // br),
        in_specs=[
            pl.BlockSpec((pl.Squeezed(), c, br, 128), lambda b, i: (b, 0, i, 0)),
            pl.BlockSpec((pl.Squeezed(), c, br, 128), lambda b, i: (b, 0, i, 0)),
        ],
        out_specs=pl.BlockSpec((pl.Squeezed(), br, 128), lambda b, i: (b, i, 0)),
        compiler_params=pltpu.CompilerParams(
            dimension_semantics=("parallel", "parallel")),
    )(t4, s4)

    if hwp != hw:
        return d.reshape(n, hwp)[:, :hw].reshape(n * hw)
    return d.reshape(n * hw)


# ----------------------------- kernel 2 ------------------------------------
def _masked_mean_kernel(thresh_ref, d_ref, out_ref, sum_acc, cnt_acc):
    # thresh_ref: SMEM (1,); d_ref: (BR, 128); out_ref: (1, 1);
    # sum_acc / cnt_acc: (BR, 128) VMEM accumulators resident across the grid.
    i = pl.program_id(0)

    @pl.when(i == 0)
    def _():
        sum_acc[...] = jnp.zeros_like(sum_acc)
        cnt_acc[...] = jnp.zeros_like(cnt_acc)

    d = d_ref[...]
    mask = d >= thresh_ref[0]
    sum_acc[...] += jnp.where(mask, d, 0.0)
    cnt_acc[...] += mask.astype(jnp.float32)

    @pl.when(i == pl.num_programs(0) - 1)
    def _():
        out_ref[...] = (jnp.sum(sum_acc[...]) / jnp.sum(cnt_acc[...])).reshape(1, 1)


def masked_mean_pallas(d_flat, thresh, block_rows=256):
    """mean of d_flat[d_flat >= thresh]; tiled, sublane/lane-dense streaming."""
    m = d_flat.shape[0]
    rows = (m + 127) // 128
    if rows <= block_rows:
        br, rows_p = rows, rows
    else:
        br = block_rows                                  # multiple of 8
        rows_p = ((rows + br - 1) // br) * br
    pad = rows_p * 128 - m
    if pad:
        d_flat = jnp.pad(d_flat, (0, pad), constant_values=_FILL)
    d2 = d_flat.reshape(rows_p, 128)
    th = jnp.reshape(thresh, (1,)).astype(jnp.float32)

    out = pl.pallas_call(
        _masked_mean_kernel,
        out_shape=jax.ShapeDtypeStruct((1, 1), jnp.float32),
        grid=(rows_p // br,),
        in_specs=[
            pl.BlockSpec(memory_space=pltpu.MemorySpace.SMEM),
            pl.BlockSpec((br, 128), lambda i: (i, 0)),
        ],
        out_specs=pl.BlockSpec((1, 1), lambda i: (0, 0)),
        scratch_shapes=[
            pltpu.VMEM((br, 128), jnp.float32),
            pltpu.VMEM((br, 128), jnp.float32),
        ],
        compiler_params=pltpu.CompilerParams(
            dimension_semantics=("arbitrary",)),
    )(th, d2)
    return out[0, 0]


# ----------------------------- glue ----------------------------------------
def _torch_quantile_linear(d_flat, q):
    """torch.quantile(d, q) with default 'linear' interpolation (needs a sort)."""
    n = d_flat.shape[0]
    pos = q * (n - 1)
    lo = int(math.floor(pos))
    hi = int(math.ceil(pos))
    frac = jnp.float32(pos - lo)
    srt = jnp.sort(d_flat)
    return srt[lo] + frac * (srt[hi] - srt[lo])


def ts_loss(teacher_outputs, student_outputs):
    loss = jnp.float32(0.0)
    for t, s in zip(teacher_outputs, student_outputs):
        dist = cosine_distance_pallas(t, s)             # Pallas: cosine distance
        d_hard = _torch_quantile_linear(dist, 0.95)     # JAX glue: sort + interp
        loss = loss + masked_mean_pallas(dist, d_hard)  # Pallas: masked mean
    return loss


# ----------------------------- main ----------------------------------------
if __name__ == "__main__":
    key = jax.random.PRNGKey(0)
    k1, k2, k3, k4 = jax.random.split(key, 4)

    # Two teacher/student feature-map pairs (NCHW).
    # Pair 1 (H*W = 64) exercises the lane-padding fallback path.
    t0 = jax.random.normal(k1, (2, 4, 16, 16), dtype=jnp.float32)
    s0 = jax.random.normal(k2, (2, 4, 16, 16), dtype=jnp.float32)
    t1 = jax.random.normal(k3, (2, 8, 8, 8), dtype=jnp.float32)
    s1 = jax.random.normal(k4, (2, 8, 8, 8), dtype=jnp.float32)

    teacher_outputs = [t0, t1]
    student_outputs = [s0, s1]

    loss = ts_loss(teacher_outputs, student_outputs)
    jax.block_until_ready(loss)

    # Pure-JAX reference check of the same math (sanity, not a benchmark).
    def _ref_pair(t, s):
        w12 = jnp.sum(t * s, axis=1)
        w1 = jnp.sum(t * t, axis=1)
        w2 = jnp.sum(s * s, axis=1)
        cos = w12 / jnp.sqrt(jnp.maximum(w1 * w2, _EPS * _EPS))
        d = (1.0 - cos).reshape(-1)
        dh = _torch_quantile_linear(d, 0.95)
        m = d >= dh
        return jnp.sum(jnp.where(m, d, 0.0)) / jnp.sum(m.astype(jnp.float32))

    ref = _ref_pair(t0, s0) + _ref_pair(t1, s1)
    assert jnp.allclose(loss, ref, rtol=1e-4, atol=1e-4), (loss, ref)

    print("KERNEL_OK")
</pallas_src>

<mosaic_0001>
module attributes {stable_mosaic.version = 11 : i64} {
  func.func @_cosine_distance_kernel(%arg0: i32, %arg1: i32, %arg2: memref<1x4x2x128xf32, #tpu.memory_space<vmem>>, %arg3: memref<1x4x2x128xf32, #tpu.memory_space<vmem>>, %arg4: memref<1x2x128xf32, #tpu.memory_space<vmem>>) attributes {dimension_semantics = [#tpu.dimension_semantics<parallel>, #tpu.dimension_semantics<parallel>], iteration_bounds = array<i64: 2, 1>, scalar_prefetch = 0 : i64, scratch_operands = 0 : i64, tpu.core_type = #tpu.core_type<tc>, window_params = [{transform_indices = @transform_0, window_bounds = array<i64: 1, 4, 2, 128>}, {transform_indices = @transform_1, window_bounds = array<i64: 1, 4, 2, 128>}, {transform_indices = @transform_2, window_bounds = array<i64: 1, 2, 128>}]} {
    %c0 = arith.constant 0 : index
    %c0_0 = arith.constant 0 : index
    %c0_1 = arith.constant 0 : index
    %c0_2 = arith.constant 0 : index
    %0 = vector.load %arg2[%c0, %c0_0, %c0_1, %c0_2] : memref<1x4x2x128xf32, #tpu.memory_space<vmem>>, vector<1x4x2x128xf32>
    %1 = vector.shape_cast %0 : vector<1x4x2x128xf32> to vector<4x2x128xf32>
    %c0_3 = arith.constant 0 : index
    %c0_4 = arith.constant 0 : index
    %c0_5 = arith.constant 0 : index
    %c0_6 = arith.constant 0 : index
    %2 = vector.load %arg3[%c0_3, %c0_4, %c0_5, %c0_6] : memref<1x4x2x128xf32, #tpu.memory_space<vmem>>, vector<1x4x2x128xf32>
    %3 = vector.shape_cast %2 : vector<1x4x2x128xf32> to vector<4x2x128xf32>
    %4 = arith.mulf %1, %3 : vector<4x2x128xf32>
    %cst = arith.constant dense<0.000000e+00> : vector<2x128xf32>
    %5 = vector.multi_reduction <add>, %4, %cst [0] : vector<4x2x128xf32> to vector<2x128xf32>
    %6 = arith.mulf %1, %1 : vector<4x2x128xf32>
    %cst_7 = arith.constant dense<0.000000e+00> : vector<2x128xf32>
    %7 = vector.multi_reduction <add>, %6, %cst_7 [0] : vector<4x2x128xf32> to vector<2x128xf32>
    %8 = arith.mulf %3, %3 : vector<4x2x128xf32>
    %cst_8 = arith.constant dense<0.000000e+00> : vector<2x128xf32>
    %9 = vector.multi_reduction <add>, %8, %cst_8 [0] : vector<4x2x128xf32> to vector<2x128xf32>
    %10 = arith.mulf %7, %9 : vector<2x128xf32>
    %cst_9 = arith.constant 1.000000e-16 : f32
    %11 = vector.broadcast %cst_9 : f32 to vector<2x128xf32>
    %12 = arith.maximumf %10, %11 : vector<2x128xf32>
    %13 = math.rsqrt %12 : vector<2x128xf32>
    %14 = arith.mulf %5, %13 : vector<2x128xf32>
    %cst_10 = arith.constant 1.000000e+00 : f32
    %15 = vector.broadcast %cst_10 : f32 to vector<2x128xf32>
    %16 = arith.subf %15, %14 : vector<2x128xf32>
    %c0_11 = arith.constant 0 : index
    %c0_12 = arith.constant 0 : index
    %c0_13 = arith.constant 0 : index
    %17 = vector.load %arg4[%c0_11, %c0_12, %c0_13] : memref<1x2x128xf32, #tpu.memory_space<vmem>>, vector<1x2x128xf32>
    %18 = vector.shape_cast %17 : vector<1x2x128xf32> to vector<2x128xf32>
    %19 = vector.shape_cast %16 : vector<2x128xf32> to vector<1x2x128xf32>
    tpu.vector_store %arg4[%c0_11, %c0_12, %c0_13], %19 {strides = array<i32>} : memref<1x2x128xf32, #tpu.memory_space<vmem>>, vector<1x2x128xf32>,
    return
  }
  func.func @transform_0(%arg0: i32, %arg1: i32) -> (i32, i32, i32, i32) {
    %c0_i32 = arith.constant 0 : i32
    %c0_i32_0 = arith.constant 0 : i32
    %c0_i32_1 = arith.constant 0 : i32
    return %arg0, %c0_i32, %arg1, %c0_i32_0 : i32, i32, i32, i32
  }
  func.func @transform_1(%arg0: i32, %arg1: i32) -> (i32, i32, i32, i32) {
    %c0_i32 = arith.constant 0 : i32
    %c0_i32_0 = arith.constant 0 : i32
    %c0_i32_1 = arith.constant 0 : i32
    return %arg0, %c0_i32, %arg1, %c0_i32_0 : i32, i32, i32, i32
  }
  func.func @transform_2(%arg0: i32, %arg1: i32) -> (i32, i32, i32) {
    %c0_i32 = arith.constant 0 : i32
    %c0_i32_0 = arith.constant 0 : i32
    return %arg0, %arg1, %c0_i32 : i32, i32, i32
  }
}

</mosaic_0001>

<bundles_post_ra>
// kernel: tpu_custom_call.1
= control target key start
LH: loop header
LB: loop body
LE: loop exit
PB: predicated region body
PF: predicated region fallthrough
CT: control target
= control target key end

     0   :  { %7 = vsyncpa [#allocation3], 0  ;;  %s816_s0 = inlined_call_operand.hbm [shape: f32[2,4,2,128], index: 0, kind: input, shape index: {}]   ;;  %s817_s1 = inlined_call_operand.hbm [shape: f32[2,4,2,128], index: 1, kind: input, shape index: {}]   ;;  %s818_s2 = inlined_call_operand.hbm [shape: f32[2,2,128], index: 2, kind: output, shape index: {}]  }
   0x1   :  { %9 = vsyncpa [#allocation3 + $0x1], 0 }
   0x2   :  { %10 = vsyncpa [#allocation6], 0 }
   0x3   :  { %12 = vsyncpa [#allocation6 + $0x1], 0 }
   0x4   :  { %13 = vsyncpa [#allocation4], 0 }
   0x5   :  { %15 = vsyncpa [#allocation4 + $0x1], 0  ;;  %s662_s9 = smov 0   ;;  %s664_s10 = smov 0  }
   0x6   :  { %s666_s11 = smov 0   ;;  %s668_s12 = smov 0  }
   0x7   :  { %s670_s13 = smov 0   ;;  %s672_s14 = smov 0  }
   0x8 LB: > { %s406_s15 = sadd.s32 4294967295, %s643_s14   ;;  %s407_s16 = sadd.s32 4294967294, %s643_s14   ;;  %s643_s14 = sphi %s672_s14, %s21_s14   ;;  %s639_s13 = sphi %s670_s13, %s828_s13   ;;  %s635_s12 = sphi %s668_s12, %s827_s12   ;;  %s631_s11 = sphi %s666_s11, %s826_s11   ;;  %s627_s10 = sphi %s664_s10, %s825_s10   ;;  %s623_s9 = sphi %s662_s9, %s824_s9  }
   0x9   : > { %s33_s17 = sadd.s32 1, %s639_s13  ;;  %s42_s18 = sadd.s32 1, %s631_s11 }
   0xa   : > { %p35_p0 = scmp.ge.s32.totalorder %s33_s17, 2  ;;  %p49_p1 = scmp.ne.s32.totalorder %s631_s11, %s627_s10 }
   0xb   : > { %p50_p2 = scmp.eq.s32.totalorder %s643_s14, 0  ;;  %p55_p3 = scmp.ne.s32.totalorder %s627_s10, %s623_s9 }
   0xc   : > { %s830_s17 = smov (%p35_p0, %s33_s17), 0  ;;  %p56_p5 = scmp.eq.s32.totalorder %s406_s15, 0 }
   0xd   : > { %p703_p4 = por %p50_p2, %p49_p1  ;;  %s37_s20 = ssub.s32 %s639_s13, %s830_s17 }
   0xe   : > { %p109_p6 = scmp.eq.s32.totalorder %s406_s15, 1  ;;  %p40_p7 = scmp.eq.s32.totalorder %s37_s20, 0 }
   0xf   : > { %p709_p8 = por %p56_p5, %p55_p3  ;;  %p115_p10 = scmp.eq.s32.totalorder %s407_s16, 1 }
  0x10   : > { %p713_p9 = por %p109_p6, %p49_p1  ;;  %p409_p12 = scmp.ge.s32.totalorder %s643_s14, 2 }
  0x11   : > { %s718_s23 = scalar_select %p40_p7, %s631_s11, %s42_s18  }
  0x12   : > { %p720_p11 = por %p115_p10, %p55_p3  ;;  %p443_p13 = scmp.lt.s32.totalorder %s643_s14, 2 }
  0x13   : > { %s727_s25 = sand.u32 1, %s631_s11   ;;  %s424_s27 = sshll.u32 %s639_s13, 3 }
  0x14   : > { %s410_s26 = sshll.u32 %s727_s25, 3  ;;  %s145_s30 = scalar_lea.hbm %s816_s0, %s424_s27 }
  0x15   : > { %s139_s3 = scalar_lea.vmem [#allocation2], %s410_s26  ;;  %s146_s5 = sshll.u32 %s145_s30, 4  ;;  %s147_s5 = int_to_ptr.hbm [resolvable:$true] %s146_s5 }
  0x16   : > { %s148_s4 = sshll.u32 %s139_s3, 4  ;;  %p736_p0 = pnand %p443_p13, %p703_p4  ;;  %s149_s4 = int_to_ptr.vmem [resolvable:$true] %s148_s4 }
  0x17   : > { %p416_p1 = scmp.ge.s32.totalorder %s643_s14, 1  ;;  %s136_s7 = scalar_lea.sflag [#allocation3], %s727_s25 }
  0x18   : > { %s645_s8 = smov 32   ;;  %s646_s15 = smov 2  }
  0x19   : > { %435 = dma.hbm_to_vmem [thread:$0]  (!%p736_p0), %s147_s5, 128, %s149_s4, %s136_s7, %s645_s8, %s645_s8, %s646_s15  }
  0x1a   : > { %p179_p2 = scmp.lt.s32.totalorder %s643_s14, 3  ;;  %s168_s20 = scalar_lea.hbm %s817_s1, %s424_s27 }
  0x1b   : > { %s169_s28 = sshll.u32 %s168_s20, 4  ;;  %s162_s19 = scalar_lea.vmem [#allocation5], %s410_s26  ;;  %s170_s28 = int_to_ptr.hbm [resolvable:$true] %s169_s28 }
  0x1c   : > { %p180_p3 = pnand %p416_p1, %p179_p2  ;;  %s171_s29 = sshll.u32 %s162_s19, 4  ;;  %s172_s29 = int_to_ptr.vmem [resolvable:$true] %s171_s29 }
  0x1d   : > { %s159_s30 = scalar_lea.sflag [#allocation6], %s727_s25  ;;  %s752_s3 = sand.u32 (!%p180_p3), 1, %s627_s10  }
  0x1e   : > { %438 = dma.hbm_to_vmem [thread:$0]  (!%p736_p0), %s170_s28, 128, %s172_s29, %s159_s30, %s645_s8, %s645_s8, %s646_s15  }
  0x1f   : > { %183 = sbr.rel (%p180_p3) target bundleno = 80 (0x50), region = 28  ;;  %s417_s4 = sshll.u32 (!%p180_p3), %s752_s3, 3 }
  0x20   : > { %s186_s5 = scalar_lea.sflag (!%p180_p3), [#allocation3], %s752_s3  ;;  %s189_s7 = scalar_lea.vmem (!%p180_p3), [#allocation2], %s417_s4 }
  0x24   : > { %610 = dma.done.wait (%p709_p8), %s186_s5, 128  }
  0x25   : > { %612 = vsyncadd (%p709_p8), %s186_s5, 4294967168  ;;  %s196_s25 = scalar_lea.sflag [#allocation6], %s752_s3  ;;  %s199_s26 = scalar_lea.vmem [#allocation5], %s417_s4 }
  0x26   : > { %614 = dma.done.wait (%p709_p8), %s196_s25, 128  }
  0x27   : > { %616 = vsyncadd (%p709_p8), %s196_s25, 4294967168  ;;  %vm238_vm0 = vcmask 1041408   ;;  %v226_v0 = vld [vmem:[%s189_s7] sm:$0x3]  ;;  %v227_v1 = vld [vmem:[%s189_s7 + $0x2] sm:$0x3] }
  0x28   : > { %v228_v2 = vld [vmem:[%s189_s7 + $0x4] sm:$0x3]  ;;  %v229_v3 = vld [vmem:[%s189_s7 + $0x6] sm:$0x3]  ;;  %v230_v4 = vld [vmem:[%s199_s26] sm:$0x3]  ;;  %v246_v5 = vmul.f32 %v226_v0, %v226_v0  ;;  %v247_v6 = vmul.f32 %v227_v1, %v227_v1 }
  0x29   : > { %v248_v7 = vmul.f32 %v228_v2, %v228_v2  ;;  %v231_v8 = vld [vmem:[%s199_s26 + $0x2] sm:$0x3]  ;;  %v232_v9 = vld [vmem:[%s199_s26 + $0x4] sm:$0x3]  ;;  %v233_v10 = vld [vmem:[%s199_s26 + $0x6] sm:$0x3]  ;;  %v257_v13 = vmul.f32 %v230_v4, %v230_v4  ;;  %v249_v14 = vmul.f32 %v229_v3, %v229_v3  ;;  %v234_v32 = vmul.f32 %v230_v4, %v226_v0 }
  0x2a   : > { %v250_v11 = vsel %vm238_vm0, %v246_v5, 0.0  ;;  %v251_v12 = vsel %vm238_vm0, %v247_v6, 0.0  ;;  %v258_v17 = vmul.f32 %v231_v8, %v231_v8  ;;  %v259_v18 = vmul.f32 %v232_v9, %v232_v9  ;;  %s419_s21 = sshll.u32 %s752_s3, 1  ;;  %s421_s27 = sshll.u32 %s635_s12, 1 }
  0x2b   : > { %v252_v15 = vadd.f32 %v251_v12, %v250_v11  ;;  %v253_v16 = vsel %vm238_vm0, %v248_v7, 0.0  ;;  %v260_v19 = vmul.f32 %v233_v10, %v233_v10  ;;  %v261_v21 = vsel %vm238_vm0, %v257_v13, 0.0  ;;  %s295_s15 = scalar_lea.hbm %s818_s2, %s421_s27  ;;  %s225_s16 = scalar_lea.vmem [#allocation7], %s419_s21 }
  0x2c   : > { %v255_v22 = vsel %vm238_vm0, %v249_v14, 0.0  ;;  %v262_v23 = vsel %vm238_vm0, %v258_v17, 0.0  ;;  %v264_v24 = vsel %vm238_vm0, %v259_v18, 0.0  ;;  %v235_v33 = vmul.f32 %v231_v8, %v227_v1  ;;  %s297_s18 = sshll.u32 %s225_s16, 4  ;;  %s299_s20 = sshll.u32 %s295_s15, 4  ;;  %s298_s18 = int_to_ptr.vmem [resolvable:$true] %s297_s18  ;;  %s300_s20 = int_to_ptr.hbm [resolvable:$true] %s299_s20 }
  0x2d   : > { %v254_v20 = vadd.f32 %v253_v16, %v252_v15  ;;  %v263_v25 = vadd.f32 %v262_v23, %v261_v21  ;;  %v266_v26 = vsel %vm238_vm0, %v260_v19, 0.0  ;;  %v236_v34 = vmul.f32 %v232_v9, %v228_v2  ;;  %s284_s28 = scalar_lea.sflag [#allocation4], %s752_s3  ;;  %s571_s12 = sshra.s32 %s300_s20, 4  ;;  %s572_s12 = int_to_ptr.hbm [resolvable:$true] %s571_s12 }
  0x2e   : > { %v239_v35 = vsel %vm238_vm0, %v234_v32, 0.0  ;;  %v240_v36 = vsel %vm238_vm0, %v235_v33, 0.0  ;;  %v237_v39 = vmul.f32 %v233_v10, %v229_v3  ;;  %s573_s19 = scalar_lea.hbm %s572_s12, 2  ;;  %s577_s4 = scalar_lea.hbm %s818_s2, 4 }
  0x2f   : > { %v256_v27 = vadd.f32 %v255_v22, %v254_v20  ;;  %v265_v28 = vadd.f32 %v264_v24, %v263_v25  ;;  %v241_v38 = vadd.f32 %v240_v36, %v239_v35  ;;  %v242_v40 = vsel %vm238_vm0, %v236_v34, 0.0  ;;  %p574_p4 = scmp.ne.s32.totalorder %s572_s12, %s573_s19  ;;  %p578_p7 = scmp.lt.s32.totalorder %s572_s12, %s818_s2 }
  0x30   : > { %v244_v44 = vsel %vm238_vm0, %v237_v39, 0.0  ;;  %p579_p8 = scmp.lt.s32.totalorder %s577_s4, %s573_s19 }
  0x31   : > { %v267_v29 = vadd.f32 %v266_v26, %v265_v28  ;;  %v243_v43 = vadd.f32 %v242_v40, %v241_v38  ;;  %p575_p5 = pnand %p574_p4, %p713_p9 }
  0x32   : > { %p580_p10 = por %p579_p8, %p578_p7 }
  0x33   : > { %v268_v30 = vmul.f32 %v267_v29, %v256_v27  ;;  %v245_v47 = vadd.f32 %v244_v44, %v243_v43  ;;  %p576_p6 = pneg %p575_p5 }
  0x35   : > { %v269_v31 = vmax.f32 %v268_v30, 1e-16  ;;  %p581_p13 = pnand %p580_p10, %p576_p6 }
  0x37   : > { %495 = vrsqrt.f32 %v269_v31  ;;  %vm276_vm1 = vweird.f32 %v269_v31 }
  0x3d   : > { %v496_v37 = vpop.eup %495 }
  0x3e   : > { %v271_v41 = vmul.f32 %v496_v37, %v269_v31  ;;  %vm277_vm2 = vweird.f32 %v496_v37 }
  0x3f   : > { %vm278_vm3 = vmor %vm276_vm1, %vm277_vm2 }
  0x40   : > { %v272_v42 = vmul.f32 %v496_v37, %v271_v41 }
  0x42   : > { %v273_v45 = vmul.f32 0.5, %v272_v42 }
  0x44   : > { %v274_v46 = vsub.f32 1.5, %v273_v45 }
  0x46   : > { %v275_v48 = vmul.f32 %v496_v37, %v274_v46 }
  0x48   : > { %v279_v49 = vsel %vm278_vm3, %v496_v37, %v275_v48 }
  0x49   : > { %v280_v50 = vmul.f32 %v279_v49, %v245_v47 }
  0x4b   : > { %v281_v51 = vsub.f32 1.0, %v280_v50 }
  0x4d   : > { %282 = vst [vmem:[%s225_s16] sm:$0x3] %v281_v51 }
  0x4e   : > { %584 = shalt.err (!%p581_p13)
}
  0x4f   : > { %430 = dma.vmem_to_hbm [thread:$0]  (%p713_p9), %s298_s18, 32, %s300_s20, %s284_s28  }
  0x50 PF: > { %s311_s3 = sand.u32 1, %s623_s9   ;;  %p440_p0 = pnand %p409_p12, %p720_p11 }
  0x51   : > { %s312_s25 = scalar_lea.sflag [#allocation4], %s311_s3 }
  0x52   : > { %p441_p1 = pneg %p440_p0 }
  0x54   : > { %618 = dma.done.wait (%p441_p1), %s312_s25, 32  }
  0x55   : > { %620 = vsyncadd (%p441_p1), %s312_s25, 4294967264  ;;  %s21_s14 = sadd.s32 1, %s643_s14   ;;  %s824_s9 = smov %s627_s10 }
  0x56   : > { %p18_p2 = scmp.ge.s32.totalorder %s21_s14, 4   ;;  %s825_s10 = smov %s631_s11 }
  0x57   : > { %s826_s11 = smov %s718_s23  ;;  %s827_s12 = smov %s639_s13 }
  0x58   : > { %s828_s13 = smov %s830_s17  ;;  %20 = sbr.rel (!%p18_p2) target bundleno = 8 (0x8), region = 86 }
  0x5d   :  { %318 = vsyncpa [#allocation3], 1 }
  0x5e   :  { %320 = vsyncpa [#allocation3 + $0x1], 1 }
  0x5f   :  { %321 = vsyncpa [#allocation6], 1 }
  0x60   :  { %323 = vsyncpa [#allocation6 + $0x1], 1 }
  0x61   :  { %324 = vsyncpa [#allocation4], 1 }
  0x62   :  { %326 = vsyncpa [#allocation4 + $0x1], 1 }

</bundles_post_ra>
